<compile_context>
chip_gen: v5e
topology: v5e:2x2
jax: 0.10.0
libtpu: 0.0.40
codegen_flags: <defaults>
</compile_context>

<pallas_src>
import jax
import jax.numpy as jnp
from jax.experimental import pallas as pl
from jax.experimental.pallas import tpu as pltpu

EPS = 1e-6


def _encoder_norm_kernel(x_ref, alpha_ref, bias_ref, o_ref):
    # x_ref:     (ROW_TILE, F)   one tile of rows
    # alpha_ref: (1, F)          scale (broadcast over rows)
    # bias_ref:  (1, F)          shift (broadcast over rows)
    x = x_ref[...].astype(jnp.float32)
    f = x.shape[-1]  # requires F >= 2 (unbiased variance divides by F-1)

    # Fused single pass over the lane axis: sum and sum-of-squares together.
    s = jnp.sum(x, axis=-1, keepdims=True)
    ss = jnp.sum(x * x, axis=-1, keepdims=True)
    mean = s * (1.0 / f)
    # Unbiased (N-1) variance, matching torch.std() default (ddof=1).
    var = (ss - s * mean) * (1.0 / (f - 1))
    var = jnp.maximum(var, 0.0)  # guard tiny negatives from cancellation
    std = jnp.sqrt(var)

    # eps added to std (not variance), exactly like the PyTorch module.
    d = std + EPS
    # EUP reciprocal seed + two Newton-Raphson refinements on the VPU:
    # the divide leaves the VALU path, accuracy stays at full f32.
    inv = pl.reciprocal(d, approx=True)
    inv = inv * (2.0 - d * inv)
    inv = inv * (2.0 - d * inv)

    alpha = alpha_ref[...].astype(jnp.float32)
    bias = bias_ref[...].astype(jnp.float32)
    y = (x - mean) * (alpha * inv) + bias
    o_ref[...] = y.astype(o_ref.dtype)


def _round_up(n, m):
    return ((n + m - 1) // m) * m


def _choose_row_tile(rows, feat, itemsize):
    """Pick a large, generation-safe row tile.

    Target ~2 MiB per activation block: double-buffered input + output is then
    ~8 MiB of VMEM, comfortably inside v7x's 64 MiB (v5e/v6e have 128 MiB).
    """
    sublane = 8 if itemsize >= 4 else 16  # f32 -> 8 rows, bf16/fp16 -> 16 rows
    target_bytes = 2 * 1024 * 1024
    rt = (target_bytes // max(feat * itemsize, 1)) // sublane * sublane
    rt = max(rt, sublane)
    rt = min(rt, 2048)                      # keep per-step DMA reasonable
    rt = min(rt, _round_up(rows, sublane))  # never bigger than the (padded) data
    return max(rt, sublane)


def encoder_forward(x, mask, alpha, bias, *, row_tile=None):
    """Encoder.forward(x, mask) with an empty layer list.

    x:     (B, S, F) activations (f32 or bf16; output dtype matches input)
    mask:  unused by the final norm (only consumed by the — here empty —
           encoder layers); kept for signature parity.
    alpha: (F,) LayerNormalization scale
    bias:  (F,) LayerNormalization shift
    """
    del mask  # no layers -> mask unused
    B, S, F = x.shape
    rows = B * S
    itemsize = jnp.dtype(x.dtype).itemsize
    if row_tile is None:
        row_tile = _choose_row_tile(rows, F, itemsize)

    x2d = x.reshape(rows, F)
    alpha2d = alpha.reshape(1, F)
    bias2d = bias.reshape(1, F)

    num_tiles = pl.cdiv(rows, row_tile)  # masked tail block handles remainders

    # Explicit VMEM budget: double-buffered input + double-buffered output
    # + params + slack, capped below v7x's 64 MiB physical VMEM.
    block_bytes = row_tile * F * itemsize
    param_bytes = 2 * F * jnp.dtype(alpha.dtype).itemsize
    vmem_limit = int(min(64 * 1024 * 1024,
                         max(16 * 1024 * 1024,
                             4 * block_bytes + 4 * param_bytes + (4 << 20))))

    out2d = pl.pallas_call(
        _encoder_norm_kernel,
        out_shape=jax.ShapeDtypeStruct((rows, F), x.dtype),
        grid=(num_tiles,),
        in_specs=[
            pl.BlockSpec((row_tile, F), lambda i: (i, 0)),
            pl.BlockSpec((1, F), lambda i: (0, 0)),
            pl.BlockSpec((1, F), lambda i: (0, 0)),
        ],
        out_specs=pl.BlockSpec((row_tile, F), lambda i: (i, 0)),
        compiler_params=pltpu.CompilerParams(
            dimension_semantics=("parallel",),
            vmem_limit_bytes=vmem_limit,
        ),
    )(x2d, alpha2d, bias2d)

    return out2d.reshape(B, S, F)


def _reference(x, alpha, bias):
    # Pure-JAX reference mirroring the PyTorch LayerNormalization exactly.
    x = x.astype(jnp.float32)
    mean = jnp.mean(x, axis=-1, keepdims=True)
    var = jnp.sum((x - mean) ** 2, axis=-1, keepdims=True) / (x.shape[-1] - 1)
    std = jnp.sqrt(var)
    return alpha.astype(jnp.float32) * (x - mean) / (std + EPS) + bias.astype(jnp.float32)


if __name__ == "__main__":
    key = jax.random.PRNGKey(0)
    B, S, F = 2, 8, 32  # batch, seq, features (hidden)

    kx, _ = jax.random.split(key)
    x = jax.random.normal(kx, (B, S, F), dtype=jnp.float32)
    mask = jnp.ones((B, 1, 1, S), dtype=jnp.float32)  # passed through, unused

    # Deterministic parameter init, matching nn.Parameter(torch.ones/zeros).
    alpha = jnp.ones((F,), dtype=jnp.float32)
    bias = jnp.zeros((F,), dtype=jnp.float32)

    # f32 path
    out = encoder_forward(x, mask, alpha, bias)
    out = jax.block_until_ready(out)
    ref = _reference(x, alpha, bias)
    assert out.shape == (B, S, F)
    assert out.dtype == x.dtype
    assert jnp.allclose(out, ref, atol=1e-5, rtol=1e-5)

    # bf16 I/O path (f32 math inside the kernel); loose tolerance for bf16 cast.
    x_bf16 = x.astype(jnp.bfloat16)
    out_bf16 = encoder_forward(x_bf16, mask, alpha, bias)
    out_bf16 = jax.block_until_ready(out_bf16)
    ref_bf16 = _reference(x_bf16.astype(jnp.float32), alpha, bias)
    assert out_bf16.dtype == jnp.bfloat16
    assert jnp.allclose(out_bf16.astype(jnp.float32), ref_bf16, atol=5e-2, rtol=5e-2)

    print("KERNEL_OK")
</pallas_src>

<mosaic_0001>
module attributes {stable_mosaic.version = 11 : i64} {
  func.func @_encoder_norm_kernel(%arg0: i32, %arg1: memref<16x32xf32, #tpu.memory_space<vmem>>, %arg2: memref<1x32xf32, #tpu.memory_space<vmem>>, %arg3: memref<1x32xf32, #tpu.memory_space<vmem>>, %arg4: memref<16x32xf32, #tpu.memory_space<vmem>>) attributes {dimension_semantics = [#tpu.dimension_semantics<parallel>], iteration_bounds = array<i64: 1>, scalar_prefetch = 0 : i64, scratch_operands = 0 : i64, tpu.core_type = #tpu.core_type<tc>, window_params = [{transform_indices = @transform_0, window_bounds = array<i64: 16, 32>}, {pipeline_mode = #tpu.pipeline_mode<synchronous>, transform_indices = @transform_1, window_bounds = array<i64: 1, 32>}, {pipeline_mode = #tpu.pipeline_mode<synchronous>, transform_indices = @transform_2, window_bounds = array<i64: 1, 32>}, {transform_indices = @transform_3, window_bounds = array<i64: 16, 32>}]} {
    %c0 = arith.constant 0 : index
    %c0_0 = arith.constant 0 : index
    %0 = vector.load %arg1[%c0, %c0_0] : memref<16x32xf32, #tpu.memory_space<vmem>>, vector<16x32xf32>
    %cst = arith.constant dense<0.000000e+00> : vector<16xf32>
    %1 = vector.multi_reduction <add>, %0, %cst [1] : vector<16x32xf32> to vector<16xf32>
    %2 = vector.shape_cast %1 : vector<16xf32> to vector<16x1xf32>
    %3 = arith.mulf %0, %0 : vector<16x32xf32>
    %cst_1 = arith.constant dense<0.000000e+00> : vector<16xf32>
    %4 = vector.multi_reduction <add>, %3, %cst_1 [1] : vector<16x32xf32> to vector<16xf32>
    %5 = vector.shape_cast %4 : vector<16xf32> to vector<16x1xf32>
    %cst_2 = arith.constant 3.125000e-02 : f32
    %6 = vector.broadcast %cst_2 : f32 to vector<16x1xf32>
    %7 = arith.mulf %2, %6 : vector<16x1xf32>
    %8 = arith.mulf %2, %7 : vector<16x1xf32>
    %9 = arith.subf %5, %8 : vector<16x1xf32>
    %cst_3 = arith.constant 0.0322580636 : f32
    %10 = vector.broadcast %cst_3 : f32 to vector<16x1xf32>
    %11 = arith.mulf %9, %10 : vector<16x1xf32>
    %cst_4 = arith.constant 0.000000e+00 : f32
    %12 = vector.broadcast %cst_4 : f32 to vector<16x1xf32>
    %13 = arith.maximumf %11, %12 : vector<16x1xf32>
    %14 = math.sqrt %13 : vector<16x1xf32>
    %cst_5 = arith.constant 9.99999997E-7 : f32
    %15 = vector.broadcast %cst_5 : f32 to vector<16x1xf32>
    %16 = arith.addf %14, %15 : vector<16x1xf32>
    %17 = tpu.reciprocal %16 {approx = true} : vector<16x1xf32> -> vector<16x1xf32>
    %18 = arith.mulf %16, %17 : vector<16x1xf32>
    %cst_6 = arith.constant 2.000000e+00 : f32
    %19 = vector.broadcast %cst_6 : f32 to vector<16x1xf32>
    %20 = arith.subf %19, %18 : vector<16x1xf32>
    %21 = arith.mulf %17, %20 : vector<16x1xf32>
    %22 = arith.mulf %16, %21 : vector<16x1xf32>
    %cst_7 = arith.constant 2.000000e+00 : f32
    %23 = vector.broadcast %cst_7 : f32 to vector<16x1xf32>
    %24 = arith.subf %23, %22 : vector<16x1xf32>
    %25 = arith.mulf %21, %24 : vector<16x1xf32>
    %c0_8 = arith.constant 0 : index
    %c0_9 = arith.constant 0 : index
    %26 = vector.load %arg2[%c0_8, %c0_9] : memref<1x32xf32, #tpu.memory_space<vmem>>, vector<1x32xf32>
    %c0_10 = arith.constant 0 : index
    %c0_11 = arith.constant 0 : index
    %27 = vector.load %arg3[%c0_10, %c0_11] : memref<1x32xf32, #tpu.memory_space<vmem>>, vector<1x32xf32>
    %28 = vector.broadcast %7 : vector<16x1xf32> to vector<16x32xf32>
    %29 = arith.subf %0, %28 : vector<16x32xf32>
    %30 = vector.broadcast %26 : vector<1x32xf32> to vector<16x32xf32>
    %31 = vector.broadcast %25 : vector<16x1xf32> to vector<16x32xf32>
    %32 = arith.mulf %30, %31 : vector<16x32xf32>
    %33 = arith.mulf %29, %32 : vector<16x32xf32>
    %34 = vector.broadcast %27 : vector<1x32xf32> to vector<16x32xf32>
    %35 = arith.addf %33, %34 : vector<16x32xf32>
    %c0_12 = arith.constant 0 : index
    %c0_13 = arith.constant 0 : index
    %36 = vector.load %arg4[%c0_12, %c0_13] : memref<16x32xf32, #tpu.memory_space<vmem>>, vector<16x32xf32>
    tpu.vector_store %arg4[%c0_12, %c0_13], %35 {strides = array<i32>} : memref<16x32xf32, #tpu.memory_space<vmem>>, vector<16x32xf32>,
    return
  }
  func.func @transform_0(%arg0: i32) -> (i32, i32) {
    %c0_i32 = arith.constant 0 : i32
    %c0_i32_0 = arith.constant 0 : i32
    return %arg0, %c0_i32 : i32, i32
  }
  func.func @transform_1(%arg0: i32) -> (i32, i32) {
    %c0_i32 = arith.constant 0 : i32
    %c0_i32_0 = arith.constant 0 : i32
    %c0_i32_1 = arith.constant 0 : i32
    return %c0_i32, %c0_i32_0 : i32, i32
  }
  func.func @transform_2(%arg0: i32) -> (i32, i32) {
    %c0_i32 = arith.constant 0 : i32
    %c0_i32_0 = arith.constant 0 : i32
    %c0_i32_1 = arith.constant 0 : i32
    return %c0_i32, %c0_i32_0 : i32, i32
  }
  func.func @transform_3(%arg0: i32) -> (i32, i32) {
    %c0_i32 = arith.constant 0 : i32
    %c0_i32_0 = arith.constant 0 : i32
    return %arg0, %c0_i32 : i32, i32
  }
}

</mosaic_0001>

<bundles_post_ra>
// kernel: tpu_custom_call.1
= control target key start
LH: loop header
LB: loop body
LE: loop exit
PB: predicated region body
PF: predicated region fallthrough
CT: control target
= control target key end

     0   :  { %8 = vsyncpa [#allocation3], 0  ;;  %s308_s0 = inlined_call_operand.hbm [shape: f32[16,32], index: 0, kind: input, shape index: {}]   ;;  %s309_s1 = inlined_call_operand.hbm [shape: f32[1,32], index: 1, kind: input, shape index: {}]   ;;  %s310_s2 = inlined_call_operand.vmem [shape: f32[1,32], index: 2, kind: input, shape index: {}]   ;;  %s311_s3 = inlined_call_operand.hbm [shape: f32[16,32], index: 3, kind: output, shape index: {}]  }
   0x1   :  { %9 = vsyncpa [#allocation6], 0 }
   0x2   :  { %10 = vsyncpa [#allocation4], 0  ;;  %s15_s14 = sshll.u32 %s308_s0, 4  ;;  %s243_s15 = smov [#allocation2]   ;;  %s16_s14 = int_to_ptr.hbm [resolvable:$true] %s15_s14 }
   0x3   :  { %s17_s16 = sshll.u32 %s243_s15, 4  ;;  %s29_s19 = sshll.u32 %s309_s1, 4  ;;  %s18_s16 = int_to_ptr.vmem [resolvable:$true] %s17_s16  ;;  %s30_s19 = int_to_ptr.hbm [resolvable:$true] %s29_s19 }
   0x4   :  { %s244_s20 = smov 128   ;;  %s245_s21 = smov 8  }
   0x5   :  { %23 = dma.hbm_to_vmem [thread:$0]  %s16_s14, 256, %s18_s16, [#allocation3], %s244_s20, %s244_s20, %s245_s21  }
   0x6   :  { %s246_s22 = smov [#allocation5]  }
   0x7   :  { %s31_s23 = sshll.u32 %s246_s22, 4  ;;  %s32_s23 = int_to_ptr.vmem [resolvable:$true] %s31_s23 }
   0x8   :  { %34 = dma.hbm_to_vmem [thread:$0]  %s30_s19, 16, %s32_s23, [#allocation6]  }
   0x9   :  { %237 = dma.done.wait [#allocation3], 256  }
   0xa   :  { %238 = vsyncadd [#allocation3], 4294967040 }
   0xb   :  { %239 = dma.done.wait [#allocation6], 16  }
   0xc   :  { %240 = vsyncadd [#allocation6], 4294967280  ;;  %vm47_vm0 = vcmask 261120   ;;  %v277_v0 = vld [vmem:[#allocation2] sm:$0xff]  ;;  %v284_v4 = vld [vmem:[#allocation2 + $0x8] sm:$0xff]  ;;  %s247_s24 = smov [#allocation7]  }
   0xd   :  { %v48_v1 = vsel %vm47_vm0, %v277_v0, 0.0  ;;  %v54_v2 = vmul.f32 %v277_v0, %v277_v0  ;;  %v55_v5 = vmul.f32 %v284_v4, %v284_v4  ;;  %v51_v6 = vsel %vm47_vm0, %v284_v4, 0.0  ;;  %v155_v52 = vld [vmem:[#allocation5] ss:$0 sm:$0xff]  ;;  %v156_v58 = vld [vmem:[%s310_s2] ss:$0 sm:$0xff] }
   0xe   :  { %49 = vadd.xlane.f32.xlu0 %v48_v1  ;;  %s134_s25 = sshll.u32 %s247_s24, 4  ;;  %s136_s28 = sshll.u32 %s311_s3, 4  ;;  %s135_s25 = int_to_ptr.vmem [resolvable:$true] %s134_s25  ;;  %s137_s28 = int_to_ptr.hbm [resolvable:$true] %s136_s28 }
   0xf   :  { %v56_v3 = vsel %vm47_vm0, %v54_v2, 0.0  ;;  %v59_v7 = vsel %vm47_vm0, %v55_v5, 0.0 }
  0x10   :  { %57 = vadd.xlane.f32.xlu1 %v56_v3 }
  0x16   :  { %52 = vadd.xlane.f32.xlu0 %v51_v6 }
  0x18   :  { %60 = vadd.xlane.f32.xlu1 %v59_v7 }
  0x81   :  { %v50_v8 = vpop.xlane.xlu0 %49 }
  0x82   :  { %v62_v9 = vmul.f32 0.03125, %v50_v8 }
  0x83   :  { %v58_v10 = vpop.xlane.xlu1 %57 }
  0x84   :  { %v64_v11 = vmul.f32 %v62_v9, %v50_v8  ;;  %v114_v55 = vsub.f32 %v277_v0, %v62_v9 }
  0x86   :  { %v66_v12 = vsub.f32 %v58_v10, %v64_v11 }
  0x88   :  { %v68_v13 = vmul.f32 0.032258064, %v66_v12 }
  0x89   :  { %v53_v14 = vpop.xlane.xlu0 %52 }
  0x8a   :  { %v70_v15 = vmax.f32 %v68_v13, 0.0  ;;  %v291_v16 = vmul.f32 0.03125, %v53_v14 }
  0x8b   :  { %v61_v17 = vpop.xlane.xlu1 %60 }
  0x8c   :  { %157 = vrsqrt.f32 %v70_v15  ;;  %v65_v18 = vmul.f32 %v291_v16, %v53_v14  ;;  %vm79_vm1 = vcmp.eq.f32.partialorder %v70_v15, inf  ;;  %v82_v32 = vand.u32 2147483648, %v70_v15 }
  0x8d   :  { %vm81_vm2 = vcmp.eq.f32.partialorder %v70_v15, 0.0  ;;  %v115_v1 = vsub.f32 %v284_v4, %v291_v16 }
  0x8e   :  { %v67_v19 = vsub.f32 %v61_v17, %v65_v18 }
  0x90   :  { %v69_v20 = vmul.f32 0.032258064, %v67_v19 }
  0x92   :  { %v158_v21 = vpop.eup %157  ;;  %v71_v22 = vmax.f32 %v69_v20, 0.0 }
  0x93   :  { %v73_v23 = vmul.f32 %v158_v21, %v70_v15 }
  0x94   :  { %159 = vrsqrt.f32 %v71_v22  ;;  %vm91_vm3 = vcmp.eq.f32.partialorder %v71_v22, inf  ;;  %v94_v40 = vand.u32 2147483648, %v71_v22  ;;  %vm93_vm4 = vcmp.eq.f32.partialorder %v71_v22, 0.0 }
  0x95   :  { %v74_v24 = vmul.f32 %v158_v21, %v73_v23 }
  0x97   :  { %v75_v25 = vmul.f32 0.5, %v74_v24 }
  0x99   :  { %v76_v26 = vsub.f32 1.5, %v75_v25 }
  0x9a   :  { %v160_v27 = vpop.eup %159 }
  0x9b   :  { %v77_v28 = vmul.f32 %v158_v21, %v76_v26  ;;  %v85_v29 = vmul.f32 %v160_v27, %v71_v22 }
  0x9d   :  { %v78_v30 = vmul.f32 %v77_v28, %v70_v15  ;;  %v86_v31 = vmul.f32 %v160_v27, %v85_v29 }
  0x9f   :  { %v87_v33 = vmul.f32 0.5, %v86_v31  ;;  %v80_v34 = vsel %vm79_vm1, %v70_v15, %v78_v30 }
  0xa0   :  { %v83_v35 = vsel %vm81_vm2, %v82_v32, %v80_v34 }
  0xa1   :  { %v88_v36 = vsub.f32 1.5, %v87_v33  ;;  %v96_v37 = vadd.f32 1e-06, %v83_v35 }
  0xa3   :  { %v89_v38 = vmul.f32 %v160_v27, %v88_v36  ;;  %161 = vrcp.f32 %v96_v37 }
  0xa5   :  { %v90_v39 = vmul.f32 %v89_v38, %v71_v22 }
  0xa7   :  { %v92_v41 = vsel %vm91_vm3, %v71_v22, %v90_v39 }
  0xa8   :  { %v95_v42 = vsel %vm93_vm4, %v94_v40, %v92_v41 }
  0xa9   :  { %v162_v43 = vpop.eup %161  ;;  %v97_v44 = vadd.f32 1e-06, %v95_v42 }
  0xaa   :  { %v100_v45 = vmul.f32 %v162_v43, %v96_v37 }
  0xab   :  { %163 = vrcp.f32 %v97_v44 }
  0xac   :  { %v102_v46 = vsub.f32 2.0, %v100_v45 }
  0xae   :  { %v104_v47 = vmul.f32 %v162_v43, %v102_v46 }
  0xb0   :  { %v106_v48 = vmul.f32 %v104_v47, %v96_v37 }
  0xb1   :  { %v164_v49 = vpop.eup %163 }
  0xb2   :  { %v101_v50 = vmul.f32 %v164_v49, %v97_v44  ;;  %v108_v51 = vsub.f32 2.0, %v106_v48 }
  0xb4   :  { %v103_v53 = vsub.f32 2.0, %v101_v50  ;;  %v110_v54 = vmul.f32 %v108_v51, %v104_v47 }
  0xb6   :  { %v105_v56 = vmul.f32 %v164_v49, %v103_v53  ;;  %v119_v57 = vmul.f32 %v155_v52, %v110_v54 }
  0xb8   :  { %v107_v59 = vmul.f32 %v105_v56, %v97_v44  ;;  %v121_v60 = vmul.f32 %v119_v57, %v114_v55 }
  0xba   :  { %v109_v61 = vsub.f32 2.0, %v107_v59  ;;  %v126_v62 = vadd.f32 %v156_v58, %v121_v60 }
  0xbc   :  { %v111_v63 = vmul.f32 %v109_v61, %v105_v56  ;;  %128 = vst.msk [vmem:[#allocation7] sm:$0xff] %vm47_vm0, %v126_v62 }
  0xbe   :  { %v120_v2 = vmul.f32 %v155_v52, %v111_v63 }
  0xc0   :  { %v122_v0 = vmul.f32 %v120_v2, %v115_v1 }
  0xc2   :  { %v127_v3 = vadd.f32 %v156_v58, %v122_v0 }
  0xc4   :  { %129 = vst.msk [vmem:[#allocation7 + $0x8] sm:$0xff] %vm47_vm0, %v127_v3 }
  0xc5   :  { %142 = dma.vmem_to_hbm [thread:$0]  %s135_s25, 256, %s137_s28, [#allocation4], %s244_s20, %s244_s20, %s245_s21  }
  0xc6   :  { %241 = dma.done.wait [#allocation4], 256  }
  0xc7   :  { %242 = vsyncadd [#allocation4], 4294967040 }
  0xc8   :  { %147 = vsyncpa [#allocation3], 1 }
  0xc9   :  { %148 = vsyncpa [#allocation6], 1 }
  0xca   :  { %149 = vsyncpa [#allocation4], 1 }

</bundles_post_ra>
